<compile_context>
chip_gen: v5e
topology: v5e:2x2
jax: 0.10.0
libtpu: 0.0.40
codegen_flags: <defaults>
</compile_context>

<pallas_src>
import functools

import jax
import jax.numpy as jnp
from jax.experimental import pallas as pl
from jax.experimental.pallas import tpu as pltpu


def _round_up(x, m):
    return (x + m - 1) // m * m


def _cdiv(a, b):
    return (a + b - 1) // b


def _vmem_capacity_bytes(default=64 * 1024 * 1024):
    """Physical VMEM per TensorCore; conservative (v7x-safe) default."""
    try:
        cap = pltpu.get_tpu_info().vmem_capacity_bytes
        return int(cap) if cap else default
    except Exception:
        return default


# ---------------------------------------------------------------------------
# Kernels
# ---------------------------------------------------------------------------
def _conv_gemm_resident_kernel(x_ref, w_ref, b_ref, o_ref):
    # x: (tm, Kp) bf16 im2col rows
    # w: (Kp, Coutp) bf16, VMEM-resident (constant index_map -> fetched once)
    # b: (1, Coutp) f32
    # o: (tm, Coutp)
    o_ref[...] = (jnp.dot(x_ref[...], w_ref[...],
                          preferred_element_type=jnp.float32)
                  + b_ref[...]).astype(o_ref.dtype)


def _conv_gemm_tiled_kernel(x_ref, w_ref, b_ref, o_ref, acc_ref):
    # x: (tm, tk)   w: (tk, tn)   b: (1, tn)   o: (tm, tn)   acc: (tm, tn) f32
    k = pl.program_id(2)

    @pl.when(k == 0)
    def _():
        acc_ref[...] = jnp.zeros_like(acc_ref)

    acc_ref[...] += jnp.dot(x_ref[...], w_ref[...],
                            preferred_element_type=jnp.float32)

    @pl.when(k == pl.num_programs(2) - 1)
    def _():
        o_ref[...] = (acc_ref[...] + b_ref[...]).astype(o_ref.dtype)


def _avgpool_kernel(x_ref, o_ref, *, c):
    # x_ref: (1, th, 2, Wo, 2*C) -- contiguous NHWC row block (free reshape)
    # o_ref: (1, th, Wo, C)
    a = x_ref[0, :, 0, :, :]           # even input rows  (th, Wo, 2*C)
    b = x_ref[0, :, 1, :, :]           # odd input rows   (th, Wo, 2*C)
    s = ((a[:, :, :c] + a[:, :, c:])
         + (b[:, :, :c] + b[:, :, c:])).astype(jnp.float32)
    o_ref[0] = (0.25 * s).astype(o_ref.dtype)


# ---------------------------------------------------------------------------
# Wrappers (glue: layout transforms, im2col gather, parameter reshape/pad)
# ---------------------------------------------------------------------------
def downsample_conv2d(x_nchw, weight_oihw, bias, *,
                      gemm_dtype=jnp.bfloat16,
                      tm_max=None, tk_max=2048, min_k_steps=1,
                      resident_weight_max_bytes=4 * 1024 * 1024):
    """Downsample with use_conv=True, dims=2: 3x3 conv, stride 2, padding 0."""
    N, Cin, H, W = x_nchw.shape
    Cout = weight_oihw.shape[0]
    KH = KW = 3
    S = 2
    Ho = (H - KH) // S + 1
    Wo = (W - KW) // S + 1
    M = N * Ho * Wo
    K = KH * KW * Cin

    out_dtype = x_nchw.dtype
    in_item = jnp.dtype(gemm_dtype).itemsize
    out_item = jnp.dtype(out_dtype).itemsize

    # --- per-generation VMEM budget -----------------------------------------
    big_vmem = _vmem_capacity_bytes() >= 96 * 1024 * 1024   # v5e/v6e: 128 MiB
    if tm_max is None:
        tm_max = 2048 if big_vmem else 1024                 # v7x: 64 MiB VMEM
    vmem_limit = (56 if big_vmem else 40) * 1024 * 1024
    block_budget = int(vmem_limit * 0.55)                   # pipelined blocks

    # --- K / Cout tiling ------------------------------------------------------
    Kp1 = _round_up(K, 128)
    Coutp128 = _round_up(Cout, 128)
    use_resident = (min_k_steps <= 1 and
                    Kp1 * Coutp128 * in_item <= resident_weight_max_bytes)
    if use_resident:
        # whole (Kp x Coutp) weight in one constant-index block, no K axis
        nk, tk, Kp = 1, Kp1, Kp1
        Coutp, tn = Coutp128, Coutp128
    else:
        nk = max(min_k_steps, _cdiv(K, tk_max))
        tk = _round_up(_cdiv(K, nk), 128)        # balanced, 128-aligned chunks
        Kp = nk * tk                             # pad K so every chunk is full
        # Prefer 256-aligned Cout (256-wide v6e/v7x MXU feeds) when padding
        # waste is bounded; otherwise stay 128-aligned (memory-bound regime).
        Coutp = _round_up(Cout, 256)
        if Coutp - Cout > max(Cout // 4, 0):
            Coutp = Coutp128
        tn = 256 if Coutp % 256 == 0 else 128

    # --- M tiling -------------------------------------------------------------
    per_row = 2 * tk * in_item + 2 * tn * out_item           # double-buffered
    tm = min(tm_max, max(16, (block_budget // per_row) // 16 * 16))
    if M <= tm:
        tm = M                                   # full-extent block is legal
        if M >= 512:                             # keep >=2 parallel M tiles (v7x)
            tm = _round_up(_cdiv(M, 2), 16)

    # --- glue: NCHW->NHWC, bf16 cast, im2col gather of the 9 taps ------------
    x = jnp.transpose(x_nchw, (0, 2, 3, 1)).astype(gemm_dtype)
    taps = []
    for kh in range(KH):
        for kw in range(KW):
            taps.append(x[:, kh:kh + S * (Ho - 1) + 1:S,
                           kw:kw + S * (Wo - 1) + 1:S, :])
    if Kp > K:
        taps.append(jnp.zeros((N, Ho, Wo, Kp - K), dtype=gemm_dtype))
    xcol = jnp.concatenate(taps, axis=-1).reshape(M, Kp)

    # weight (Cout, Cin, 3, 3) -> (K, Cout) in the same tap ordering; zero-pad
    # to (Kp, Coutp) (padded rows/cols contribute nothing).  Bias in f32.
    w = jnp.transpose(weight_oihw, (2, 3, 1, 0)).reshape(K, Cout)
    w = jnp.pad(w, ((0, Kp - K), (0, Coutp - Cout))).astype(gemm_dtype)
    b = jnp.pad(bias, (0, Coutp - Cout)).reshape(1, Coutp).astype(jnp.float32)

    if use_resident:
        out = pl.pallas_call(
            _conv_gemm_resident_kernel,
            out_shape=jax.ShapeDtypeStruct((M, Coutp), out_dtype),
            grid=(pl.cdiv(M, tm),),
            in_specs=[
                pl.BlockSpec((tm, Kp), lambda i: (i, 0)),
                pl.BlockSpec((Kp, Coutp), lambda i: (0, 0)),   # fetched once
                pl.BlockSpec((1, Coutp), lambda i: (0, 0)),
            ],
            out_specs=pl.BlockSpec((tm, Coutp), lambda i: (i, 0)),
            compiler_params=pltpu.CompilerParams(
                dimension_semantics=("parallel",),
                vmem_limit_bytes=vmem_limit),
        )(xcol, w, b)
    else:
        out = pl.pallas_call(
            _conv_gemm_tiled_kernel,
            out_shape=jax.ShapeDtypeStruct((M, Coutp), out_dtype),
            grid=(pl.cdiv(M, tm), Coutp // tn, nk),
            in_specs=[
                pl.BlockSpec((tm, tk), lambda i, j, k: (i, k)),
                pl.BlockSpec((tk, tn), lambda i, j, k: (k, j)),
                pl.BlockSpec((1, tn), lambda i, j, k: (0, j)),
            ],
            out_specs=pl.BlockSpec((tm, tn), lambda i, j, k: (i, j)),
            scratch_shapes=[pltpu.VMEM((tm, tn), jnp.float32)],
            compiler_params=pltpu.CompilerParams(
                dimension_semantics=("parallel", "parallel", "arbitrary"),
                vmem_limit_bytes=vmem_limit),
        )(xcol, w, b)

    out = out[:, :Cout].reshape(N, Ho, Wo, Cout)
    return jnp.transpose(out, (0, 3, 1, 2))  # NHWC -> NCHW (glue)


def downsample_avgpool2d(x_nchw, *, vmem_block_bytes=None):
    """Downsample with use_conv=False, dims=2: 2x2 average pool, stride 2."""
    N, C, H, W = x_nchw.shape
    Ho, Wo = H // 2, W // 2

    big_vmem = _vmem_capacity_bytes() >= 96 * 1024 * 1024
    if vmem_block_bytes is None:
        vmem_block_bytes = (16 if big_vmem else 10) * 1024 * 1024
    vmem_limit = (48 if big_vmem else 40) * 1024 * 1024

    x = jnp.transpose(x_nchw, (0, 2, 3, 1))  # NCHW -> NHWC (glue)
    if H != 2 * Ho or W != 2 * Wo:
        x = x[:, :2 * Ho, :2 * Wo, :]        # floor behaviour of AvgPool2d

    # Copy-free view: H -> (Ho, 2) row pairs, (W, C) -> (Wo, 2*C).
    x6 = x.reshape(N, Ho, 2, Wo, 2 * C)

    row_bytes = 2 * Wo * 2 * C * x6.dtype.itemsize
    th = max(1, min(Ho, vmem_block_bytes // max(1, row_bytes)))
    if N == 1 and Ho > 1:                    # keep >=2 parallel steps (v7x 2 TCs)
        th = min(th, _cdiv(Ho, 2))

    out = pl.pallas_call(
        functools.partial(_avgpool_kernel, c=C),
        out_shape=jax.ShapeDtypeStruct((N, Ho, Wo, C), x.dtype),
        grid=(N, pl.cdiv(Ho, th)),
        in_specs=[pl.BlockSpec((1, th, 2, Wo, 2 * C),
                               lambda n, i: (n, i, 0, 0, 0))],
        out_specs=pl.BlockSpec((1, th, Wo, C), lambda n, i: (n, i, 0, 0)),
        compiler_params=pltpu.CompilerParams(
            dimension_semantics=("parallel", "parallel"),
            vmem_limit_bytes=vmem_limit),
    )(x6)

    return jnp.transpose(out, (0, 3, 1, 2))  # NHWC -> NCHW (glue)


# ---------------------------------------------------------------------------
if __name__ == "__main__":
    key = jax.random.PRNGKey(0)
    kx, kw, kb = jax.random.split(key, 3)

    N, C, H, W = 2, 4, 16, 16
    Cout = C  # out_channels defaults to channels

    x = jax.random.normal(kx, (N, C, H, W), dtype=jnp.float32)
    weight = jax.random.normal(kw, (Cout, C, 3, 3), dtype=jnp.float32) * 0.1
    bias = jax.random.normal(kb, (Cout,), dtype=jnp.float32) * 0.1

    Ho, Wo = (H - 3) // 2 + 1, (W - 3) // 2 + 1
    y_ref = jax.lax.conv_general_dilated(
        x, weight, window_strides=(2, 2), padding="VALID",
        dimension_numbers=("NCHW", "OIHW", "NCHW"),
    ) + bias.reshape(1, Cout, 1, 1)

    # --- use_conv=True path: resident-weight (default, bf16) ---
    y1 = jax.block_until_ready(downsample_conv2d(x, weight, bias))
    assert y1.shape == (N, Cout, Ho, Wo)
    assert jnp.allclose(y1, y_ref, atol=5e-2, rtol=5e-2)

    # --- use_conv=True path: forced K-split (tiled) accumulator path (bf16) ---
    y2 = jax.block_until_ready(downsample_conv2d(
        x, weight, bias, resident_weight_max_bytes=0, min_k_steps=3))
    assert y2.shape == (N, Cout, Ho, Wo)
    assert jnp.allclose(y2, y_ref, atol=5e-2, rtol=5e-2)

    # --- use_conv=True path: f32 operands (exact structural check) ---
    y3 = jax.block_until_ready(downsample_conv2d(
        x, weight, bias, gemm_dtype=jnp.float32))
    assert jnp.allclose(y3, y_ref, atol=1e-4, rtol=1e-4)

    # --- use_conv=False path (AvgPool2d k=2, s=2) ---
    yp = jax.block_until_ready(downsample_avgpool2d(x))
    assert yp.shape == (N, C, H // 2, W // 2)
    yp_ref = jnp.mean(x.reshape(N, C, H // 2, 2, W // 2, 2), axis=(3, 5))
    assert jnp.allclose(yp, yp_ref, atol=1e-5, rtol=1e-5)

    print("KERNEL_OK")
</pallas_src>

<mosaic_0001>
module attributes {stable_mosaic.version = 11 : i64} {
  func.func @_conv_gemm_resident_kernel(%arg0: i32, %arg1: memref<98x128xbf16, #tpu.memory_space<vmem>>, %arg2: memref<128x128xbf16, #tpu.memory_space<vmem>>, %arg3: memref<1x128xf32, #tpu.memory_space<vmem>>, %arg4: memref<98x128xf32, #tpu.memory_space<vmem>>) attributes {dimension_semantics = [#tpu.dimension_semantics<parallel>], iteration_bounds = array<i64: 1>, scalar_prefetch = 0 : i64, scratch_operands = 0 : i64, tpu.core_type = #tpu.core_type<tc>, window_params = [{transform_indices = @transform_0, window_bounds = array<i64: 98, 128>}, {pipeline_mode = #tpu.pipeline_mode<synchronous>, transform_indices = @transform_1, window_bounds = array<i64: 128, 128>}, {pipeline_mode = #tpu.pipeline_mode<synchronous>, transform_indices = @transform_2, window_bounds = array<i64: 1, 128>}, {transform_indices = @transform_3, window_bounds = array<i64: 98, 128>}]} {
    %c0 = arith.constant 0 : index
    %c0_0 = arith.constant 0 : index
    %0 = vector.load %arg1[%c0, %c0_0] : memref<98x128xbf16, #tpu.memory_space<vmem>>, vector<98x128xbf16>
    %c0_1 = arith.constant 0 : index
    %c0_2 = arith.constant 0 : index
    %1 = vector.load %arg2[%c0_1, %c0_2] : memref<128x128xbf16, #tpu.memory_space<vmem>>, vector<128x128xbf16>
    %cst = arith.constant dense<0.000000e+00> : vector<98x128xf32>
    %2 = tpu.matmul %0, %1, %cst {dimension_numbers = #tpu.dot_dimension_numbers<[1], [0], [0], [1], [0, 0, 1, 1], [], []>} : vector<98x128xbf16>, vector<128x128xbf16>, vector<98x128xf32> -> vector<98x128xf32>
    %c0_3 = arith.constant 0 : index
    %c0_4 = arith.constant 0 : index
    %3 = vector.load %arg3[%c0_3, %c0_4] : memref<1x128xf32, #tpu.memory_space<vmem>>, vector<1x128xf32>
    %4 = vector.broadcast %3 : vector<1x128xf32> to vector<98x128xf32>
    %5 = arith.addf %2, %4 : vector<98x128xf32>
    %c0_5 = arith.constant 0 : index
    %c0_6 = arith.constant 0 : index
    %6 = vector.load %arg4[%c0_5, %c0_6] : memref<98x128xf32, #tpu.memory_space<vmem>>, vector<98x128xf32>
    tpu.vector_store %arg4[%c0_5, %c0_6], %5 {strides = array<i32>} : memref<98x128xf32, #tpu.memory_space<vmem>>, vector<98x128xf32>,
    return
  }
  func.func @transform_0(%arg0: i32) -> (i32, i32) {
    %c0_i32 = arith.constant 0 : i32
    %c0_i32_0 = arith.constant 0 : i32
    return %arg0, %c0_i32 : i32, i32
  }
  func.func @transform_1(%arg0: i32) -> (i32, i32) {
    %c0_i32 = arith.constant 0 : i32
    %c0_i32_0 = arith.constant 0 : i32
    %c0_i32_1 = arith.constant 0 : i32
    return %c0_i32, %c0_i32_0 : i32, i32
  }
  func.func @transform_2(%arg0: i32) -> (i32, i32) {
    %c0_i32 = arith.constant 0 : i32
    %c0_i32_0 = arith.constant 0 : i32
    %c0_i32_1 = arith.constant 0 : i32
    return %c0_i32, %c0_i32_0 : i32, i32
  }
  func.func @transform_3(%arg0: i32) -> (i32, i32) {
    %c0_i32 = arith.constant 0 : i32
    %c0_i32_0 = arith.constant 0 : i32
    return %arg0, %c0_i32 : i32, i32
  }
}

</mosaic_0001>

<bundles_post_ra>
// kernel: tpu_custom_call.1
= control target key start
LH: loop header
LB: loop body
LE: loop exit
PB: predicated region body
PF: predicated region fallthrough
CT: control target
= control target key end

     0   :  { %8 = vsyncpa [#allocation3], 0  ;;  %s463_s0 = inlined_call_operand.hbm [shape: bf16[98,128], index: 0, kind: input, shape index: {}]   ;;  %s464_s1 = inlined_call_operand.hbm [shape: bf16[128,128], index: 1, kind: input, shape index: {}]   ;;  %s465_s2 = inlined_call_operand.vmem [shape: f32[1,128], index: 2, kind: input, shape index: {}]   ;;  %s466_s3 = inlined_call_operand.hbm [shape: f32[98,128], index: 3, kind: output, shape index: {}]  }
   0x1   :  { %9 = vsyncpa [#allocation6], 0 }
   0x2   :  { %10 = vsyncpa [#allocation4], 0  ;;  %s15_s14 = sshll.u32 %s463_s0, 4  ;;  %s424_s15 = smov [#allocation2]   ;;  %s16_s14 = int_to_ptr.hbm [resolvable:$true] %s15_s14 }
   0x3   :  { %s17_s16 = sshll.u32 %s424_s15, 4  ;;  %s28_s19 = sshll.u32 %s464_s1, 4  ;;  %s18_s16 = int_to_ptr.vmem [resolvable:$true] %s17_s16  ;;  %s29_s19 = int_to_ptr.hbm [resolvable:$true] %s28_s19 }
   0x4   :  { %s425_s20 = smov 64   ;;  %s426_s21 = smov 4  }
   0x5   :  { %23 = dma.hbm_to_vmem [thread:$0]  %s16_s14, 832, %s18_s16, [#allocation3], %s425_s20, %s425_s20, %s426_s21  }
   0x6   :  { %s427_s22 = smov [#allocation5]  }
   0x7   :  { %s30_s23 = sshll.u32 %s427_s22, 4  ;;  %s31_s23 = int_to_ptr.vmem [resolvable:$true] %s30_s23 }
   0x8   :  { %36 = dma.hbm_to_vmem [thread:$0]  %s29_s19, 1024, %s31_s23, [#allocation6], %s425_s20, %s425_s20, %s426_s21  }
   0x9   :  { %418 = dma.done.wait [#allocation3], 832  }
   0xa   :  { %419 = vsyncadd [#allocation3], 4294966464 }
   0xb   :  { %420 = dma.done.wait [#allocation6], 1024  }
   0xc   :  { %421 = vsyncadd [#allocation6], 4294966272  ;;  %v313_v0 = vld [vmem:[#allocation5 + $0x38] sm:$0xff]  ;;  %v312_v1 = vld [vmem:[#allocation5 + $0x30] sm:$0xff]  ;;  %s230_s27 = sshll.u32 %s466_s3, 4  ;;  %s429_s28 = smov 128   ;;  %s231_s27 = int_to_ptr.hbm [resolvable:$true] %s230_s27 }
   0xd   :  { %314 = vmatpush.bf16.msra.mxu1 %v313_v0  ;;  %315 = vmatpush.bf16.msra.mxu2 %v313_v0  ;;  %v311_v2 = vld [vmem:[#allocation5 + $0x28] sm:$0xff]  ;;  %v310_v3 = vld [vmem:[#allocation5 + $0x20] sm:$0xff]  ;;  %v309_v4 = vld [vmem:[#allocation5 + $0x18] sm:$0xff]  ;;  %s430_s29 = smov 8  }
   0xe   :  { %316 = vmatpush.bf16.msra.mxu3 %v313_v0  ;;  %168 = vmatpush.bf16.msra.mxu0 %v313_v0  ;;  %v308_v5 = vld [vmem:[#allocation5 + $0x10] sm:$0xff]  ;;  %v307_v6 = vld [vmem:[#allocation5 + $0x8] sm:$0xff]  ;;  %v306_v7 = vld [vmem:[#allocation5] sm:$0xff] }
   0xf   :  { %v301_v8 = vld [vmem:[#allocation2 + $0x8] sm:$0xff]  ;;  %v303_v9 = vld [vmem:[#allocation2 + $0x18] sm:$0xff]  ;;  %v300_v11 = vld [vmem:[#allocation2] sm:$0xff] }
  0x10   :  { %v305_v10 = vld [vmem:[#allocation2 + $0x28] sm:$0xff]  ;;  %v59_v12 = vld [vmem:[#allocation2 + $0x30] sm:$0x1]  ;;  %v304_v15 = vld [vmem:[#allocation2 + $0x20] sm:$0xff] }
  0x11   :  { %317 = vmatpush.bf16.msra.mxu1 %v312_v1  ;;  %318 = vmatpush.bf16.msra.mxu2 %v312_v1  ;;  %v105_v13 = vunpack.c.l.b16 %v59_v12  ;;  %v302_v14 = vld [vmem:[#allocation2 + $0x10] sm:$0xff]  ;;  %v345_v17 = vld [vmem:[%s465_s2] ss:$0 sm:$0xff]  ;;  %s428_s2 = smov [#allocation7]  }
  0x12   :  { %319 = vmatpush.bf16.msra.mxu3 %v312_v1  ;;  %169 = vmatpush.bf16.msra.mxu0 %v312_v1  ;;  %s228_s24 = sshll.u32 %s428_s2, 4  ;;  %s229_s24 = int_to_ptr.vmem [resolvable:$true] %s228_s24 }
  0x13   :  { %v112_v16 = vpack.c.b16 %v105_v13, %v105_v13 }
  0x15   :  { %320 = vmatpush.bf16.msra.mxu1 %v311_v2  ;;  %321 = vmatpush.bf16.msra.mxu2 %v311_v2 }
  0x16   :  { %322 = vmatpush.bf16.msra.mxu3 %v311_v2  ;;  %170 = vmatpush.bf16.msra.mxu0 %v311_v2 }
  0x19   :  { %323 = vmatpush.bf16.msra.mxu1 %v310_v3  ;;  %324 = vmatpush.bf16.msra.mxu2 %v310_v3 }
  0x1a   :  { %325 = vmatpush.bf16.msra.mxu3 %v310_v3  ;;  %171 = vmatpush.bf16.msra.mxu0 %v310_v3 }
  0x1d   :  { %326 = vmatpush.bf16.msra.mxu1 %v309_v4  ;;  %327 = vmatpush.bf16.msra.mxu2 %v309_v4 }
  0x1e   :  { %328 = vmatpush.bf16.msra.mxu3 %v309_v4  ;;  %172 = vmatpush.bf16.msra.mxu0 %v309_v4 }
  0x21   :  { %329 = vmatpush.bf16.msra.mxu1 %v308_v5  ;;  %330 = vmatpush.bf16.msra.mxu2 %v308_v5 }
  0x22   :  { %331 = vmatpush.bf16.msra.mxu3 %v308_v5  ;;  %173 = vmatpush.bf16.msra.mxu0 %v308_v5 }
  0x25   :  { %332 = vmatpush.bf16.msra.mxu1 %v307_v6  ;;  %333 = vmatpush.bf16.msra.mxu2 %v307_v6 }
  0x26   :  { %334 = vmatpush.bf16.msra.mxu3 %v307_v6  ;;  %174 = vmatpush.bf16.msra.mxu0 %v307_v6 }
  0x29   :  { %335 = vmatpush.bf16.msra.mxu1 %v306_v7  ;;  %336 = vmatpush.bf16.msra.mxu2 %v306_v7 }
  0x2a   :  { %337 = vmatpush.bf16.msra.mxu3 %v306_v7  ;;  %175 = vmatpush.bf16.msra.mxu0 %v306_v7 }
  0x2c   :  { %181 = vmatmul.bf16.vlgmr.msra.gmra.mxu1 %v301_v8  ;;  %191 = vmatmul.bf16.vlgmr.msra.gmra.mxu2 %v303_v9 }
  0x2d   :  { %201 = vmatmul.bf16.vlgmr.msra.gmra.mxu3 %v305_v10  ;;  %176 = vmatmul.bf16.vlgmr.msra.gmra.mxu0 %v300_v11 }
  0x3c   :  { %186 = vmatmul.bf16.gmra.mxu1 %v302_v14  ;;  %196 = vmatmul.bf16.gmra.mxu2 %v304_v15 }
  0x3d   :  { %206 = vmatmul.bf16.gmra.mxu3 %v112_v16 }
  0xa9   :  { %v182_v18 = vpop.f32.mrf.mxu1 }
  0xaa   :  { %v183_v19 = vadd.f32 %v345_v17, %v182_v18  ;;  %v177_v20 = vpop.f32.mrf.mxu0 }
  0xab   :  { %v178_v21 = vadd.f32 %v345_v17, %v177_v20 }
  0xac   :  { %213 = vst [vmem:[#allocation7 + $0x10] sm:$0xff] %v183_v19 }
  0xad   :  { %211 = vst [vmem:[#allocation7] sm:$0xff] %v178_v21 }
  0xaf   :  { %v192_v22 = vpop.f32.mrf.mxu2 }
  0xb0   :  { %v193_v23 = vadd.f32 %v345_v17, %v192_v22  ;;  %v202_v24 = vpop.f32.mrf.mxu3 }
  0xb1   :  { %v203_v25 = vadd.f32 %v345_v17, %v202_v24  ;;  %v184_v26 = vpop.f32.mrf.mxu1 }
  0xb2   :  { %217 = vst [vmem:[#allocation7 + $0x30] sm:$0xff] %v193_v23  ;;  %v185_v27 = vadd.f32 %v345_v17, %v184_v26  ;;  %v179_v28 = vpop.f32.mrf.mxu0 }
  0xb3   :  { %221 = vst [vmem:[#allocation7 + $0x50] sm:$0xff] %v203_v25  ;;  %v180_v29 = vadd.f32 %v345_v17, %v179_v28 }
  0xb4   :  { %214 = vst [vmem:[#allocation7 + $0x18] sm:$0xff] %v185_v27 }
  0xb5   :  { %212 = vst [vmem:[#allocation7 + $0x8] sm:$0xff] %v180_v29 }
  0xb7   :  { %v194_v30 = vpop.f32.mrf.mxu2 }
  0xb8   :  { %v195_v31 = vadd.f32 %v345_v17, %v194_v30  ;;  %v204_v32 = vpop.f32.mrf.mxu3 }
  0xb9   :  { %v205_v33 = vadd.f32 %v345_v17, %v204_v32  ;;  %v187_v34 = vpop.f32.mrf.mxu1 }
  0xba   :  { %218 = vst [vmem:[#allocation7 + $0x38] sm:$0xff] %v195_v31  ;;  %v188_v35 = vadd.f32 %v345_v17, %v187_v34 }
  0xbb   :  { %222 = vst [vmem:[#allocation7 + $0x58] sm:$0xff] %v205_v33 }
  0xbc   :  { %215 = vst [vmem:[#allocation7 + $0x20] sm:$0xff] %v188_v35 }
  0xbf   :  { %v197_v36 = vpop.f32.mrf.mxu2 }
  0xc0   :  { %v198_v37 = vadd.f32 %v345_v17, %v197_v36  ;;  %v207_v38 = vpop.f32.mrf.mxu3 }
  0xc1   :  { %v208_v39 = vadd.f32 %v345_v17, %v207_v38  ;;  %v189_v40 = vpop.f32.mrf.mxu1 }
  0xc2   :  { %219 = vst [vmem:[#allocation7 + $0x40] sm:$0xff] %v198_v37  ;;  %v190_v41 = vadd.f32 %v345_v17, %v189_v40 }
  0xc3   :  { %223 = vst [vmem:[#allocation7 + $0x60] sm:$0x3] %v208_v39 }
  0xc4   :  { %216 = vst [vmem:[#allocation7 + $0x28] sm:$0xff] %v190_v41 }
  0xc7   :  { %v199_v42 = vpop.f32.mrf.mxu2 }
  0xc8   :  { %v200_v43 = vadd.f32 %v345_v17, %v199_v42  ;;  %v209_v44 = vpop.f32.mrf.mxu3 }
  0xca   :  { %220 = vst [vmem:[#allocation7 + $0x48] sm:$0xff] %v200_v43 }
  0xcb   :  { %236 = dma.vmem_to_hbm [thread:$0]  %s229_s24, 1664, %s231_s27, [#allocation4], %s429_s28, %s429_s28, %s430_s29  }
  0xcc   :  { %422 = dma.done.wait [#allocation4], 1664  }
  0xcd   :  { %423 = vsyncadd [#allocation4], 4294965632 }
  0xce   :  { %241 = vsyncpa [#allocation3], 1 }
  0xcf   :  { %242 = vsyncpa [#allocation6], 1 }
  0xd0   :  { %243 = vsyncpa [#allocation4], 1 }

</bundles_post_ra>
